<compile_context>
chip_gen: v7x
topology: tpu7x:2x2x1
jax: 0.10.0
libtpu: 0.0.40
codegen_flags: <defaults>
</compile_context>

<pallas_src>
import jax
import jax.numpy as jnp
from jax.experimental import pallas as pl
from jax.experimental.pallas import tpu as pltpu


def _round_up(x, m):
    return ((x + m - 1) // m) * m


def _quanconv_kernel(a_ref, w_ref, b_ref, o_ref):
    """One (tm, Kp) quantized-activation tile @ resident (Kp, OCp) quantized W."""
    acc = jnp.dot(a_ref[...], w_ref[...], preferred_element_type=jnp.float32)
    o_ref[...] = acc + b_ref[...]


def _dorefa_w(weight, nbit_w):
    """DoReFaW weight quantization (once, in the wrapper, exact f32)."""
    if nbit_w >= 32:
        return weight
    scale = float(2 ** nbit_w - 1)
    w = jnp.tanh(weight)
    maxv = jnp.max(jnp.abs(w))          # global max over the whole weight tensor
    w = w / (2.0 * maxv) + 0.5
    return 2.0 * (jnp.round(w * scale) / scale) - 1.0


def _dorefa_a(x, nbit_a):
    """DoReFaA activation quantization (once, in the wrapper, exact f32)."""
    if nbit_a >= 32:
        return x                         # module skips clamp too when >= 32 bits
    scale = float(2 ** nbit_a - 1)
    a = jnp.clip(x, 0.0, 1.0)
    return jnp.round(a * scale) / scale


def quanconv_forward(x, weight, bias, *, nbit_w=4, nbit_a=None,
                     stride=1, padding=0, dilation=1, tm=512):
    """x: (N, C, H, W) f32; weight: (OC, C, KH, KW) f32; bias: (OC,) f32."""
    if nbit_a is None:
        nbit_a = nbit_w                  # module sets nbit_a = nbit_w
    N, C, H, W = x.shape
    OC, _, KH, KW = weight.shape
    sh = sw = int(stride)
    ph = pw = int(padding)
    dh = dw = int(dilation)
    OH = (H + 2 * ph - dh * (KH - 1) - 1) // sh + 1
    OW = (W + 2 * pw - dw * (KW - 1) - 1) // sw + 1

    # bf16 MXU operands only when values are already quantized to few levels;
    # full-precision (32-bit) mode keeps f32 operands.
    quantized = (nbit_w < 32) and (nbit_a < 32)
    op_dtype = jnp.bfloat16 if quantized else jnp.float32
    op_bytes = jnp.dtype(op_dtype).itemsize

    # --- quantizers hoisted: exact f32 math, once per element -------------
    aq = _dorefa_a(x.astype(jnp.float32), nbit_a).astype(op_dtype)
    wq = _dorefa_w(weight.astype(jnp.float32), nbit_w)

    # --- im2col (glue, plain JAX) on the already-quantized activations ----
    ap = jnp.pad(aq, ((0, 0), (0, 0), (ph, ph), (pw, pw)))
    cols = []
    for kh in range(KH):
        for kw in range(KW):
            cols.append(ap[:, :,
                           kh * dh:kh * dh + (OH - 1) * sh + 1:sh,
                           kw * dw:kw * dw + (OW - 1) * sw + 1:sw])  # (N,C,OH,OW)
    pat = jnp.stack(cols, axis=2)                    # (N, C, KH*KW, OH, OW)
    pat = pat.transpose(0, 3, 4, 1, 2)               # (N, OH, OW, C, KH*KW)
    M = N * OH * OW
    K = C * KH * KW
    pat = pat.reshape(M, K)

    w2 = wq.reshape(OC, K).T.astype(op_dtype)        # (K, OC), same (c,kh,kw) order
    b2 = bias.reshape(1, OC).astype(jnp.float32)

    # --- lane-dense padding: K and OC up to multiples of 128 (zeros are
    #     inert because padding happens AFTER quantization) -----------------
    Kp = _round_up(max(K, 1), 128)
    OCp = _round_up(max(OC, 1), 128)
    if Kp != K:
        pat = jnp.pad(pat, ((0, 0), (0, Kp - K)))
        w2 = jnp.pad(w2, ((0, Kp - K), (0, 0)))
    if OCp != OC:
        w2 = jnp.pad(w2, ((0, 0), (0, OCp - OC)))
        b2 = jnp.pad(b2, ((0, 0), (0, OCp - OC)))

    # --- row tile: big enough to amortize per-step overhead, >= 2 steps so
    #     megacore has work for both cores, and within a safe VMEM budget ---
    tm = _round_up(max(128, min(int(tm), 1024)), 128)

    def _vmem_use(t):
        return (2 * t * Kp * op_bytes       # patch tiles (double buffered)
                + 2 * t * OCp * 4           # f32 output tiles (double buffered)
                + 2 * Kp * OCp * op_bytes   # resident quantized weight
                + 2 * OCp * 4)              # bias

    while tm > 128 and ((M + tm - 1) // tm < 2
                        or _vmem_use(tm) > 40 * 1024 * 1024):
        tm //= 2
    Mp = _round_up(M, tm)
    if Mp != M:
        pat = jnp.pad(pat, ((0, Mp - M), (0, 0)))

    # NOTE: the quantized weight is kept resident in VMEM (fine for typical
    # conv sizes); very large (Kp, OCp) would additionally need OC/K tiling.
    vmem_limit = int(min(64 * 1024 * 1024,
                         max(_vmem_use(tm) + (4 << 20), 16 * 1024 * 1024)))

    grid = (Mp // tm,)
    out = pl.pallas_call(
        _quanconv_kernel,
        out_shape=jax.ShapeDtypeStruct((Mp, OCp), jnp.float32),
        grid_spec=pltpu.PrefetchScalarGridSpec(
            num_scalar_prefetch=0,
            grid=grid,
            in_specs=[
                pl.BlockSpec((tm, Kp), lambda i: (i, 0)),    # patch row tile
                pl.BlockSpec((Kp, OCp), lambda i: (0, 0)),   # resident quantized W
                pl.BlockSpec((1, OCp), lambda i: (0, 0)),    # bias
            ],
            out_specs=pl.BlockSpec((tm, OCp), lambda i: (i, 0)),
        ),
        compiler_params=pltpu.CompilerParams(
            dimension_semantics=("parallel",),
            vmem_limit_bytes=vmem_limit),
    )(pat, w2, b2)

    out = out[:M, :OC]                                   # drop M / OC padding
    # (M, OC) -> (N, OH, OW, OC) -> NCHW
    return out.reshape(N, OH, OW, OC).transpose(0, 3, 1, 2)
    # TODO(synk): grouped convolution (groups > 1) is not implemented; the
    # module default (groups=1) is what this kernel covers.


def _reference(x, weight, bias, *, nbit_w, stride, padding):
    """Pure-JAX f32 reference replicating the PyTorch forward."""
    scale = float(2 ** nbit_w - 1)
    # DoReFaW
    w = jnp.tanh(weight)
    maxv = jnp.max(jnp.abs(w))
    w = w / (2.0 * maxv) + 0.5
    w = 2.0 * (jnp.round(w * scale) / scale) - 1.0
    # DoReFaA
    a = jnp.clip(x, 0.0, 1.0)
    a = jnp.round(a * scale) / scale
    out = jax.lax.conv_general_dilated(
        a, w, window_strides=(stride, stride),
        padding=[(padding, padding), (padding, padding)],
        dimension_numbers=("NCHW", "OIHW", "NCHW"))
    return out + bias.reshape(1, -1, 1, 1)


if __name__ == "__main__":
    key = jax.random.PRNGKey(0)
    k_x, k_w = jax.random.split(key)

    # small shapes consistent with the module
    N, C, H, W = 2, 4, 16, 16
    OC, KH, KW = 8, 3, 3
    stride, padding, nbit_w = 1, 1, 4

    x = jax.random.uniform(k_x, (N, C, H, W), jnp.float32, minval=-0.5, maxval=1.5)

    # deterministic kaiming_uniform_(mode='fan_out', nonlinearity='relu')
    fan_out = OC * KH * KW
    gain = jnp.sqrt(2.0)
    bound = float(jnp.sqrt(3.0) * gain / jnp.sqrt(fan_out))
    weight = jax.random.uniform(k_w, (OC, C, KH, KW), jnp.float32,
                                minval=-bound, maxval=bound)
    bias = jnp.zeros((OC,), jnp.float32)   # nn.Parameter(torch.zeros(out_channels))

    out = quanconv_forward(x, weight, bias, nbit_w=nbit_w,
                           stride=stride, padding=padding)
    out = jax.block_until_ready(out)

    ref = _reference(x, weight, bias, nbit_w=nbit_w,
                     stride=stride, padding=padding)
    assert out.shape == (N, OC, H, W), out.shape
    # Tolerance reflects bf16 matmul operands (quantized levels k/15 are not
    # exact in bf16); accumulation stays f32, K (non-padded) = 36 terms.
    err = float(jnp.max(jnp.abs(out - ref)))
    assert jnp.allclose(out, ref, atol=1e-1, rtol=1e-2), err

    print("KERNEL_OK")
</pallas_src>

<mosaic_0001>
module attributes {stable_mosaic.version = 11 : i64} {
  func.func @_quanconv_kernel(%arg0: i32, %arg1: memref<256x128xbf16, #tpu.memory_space<vmem>>, %arg2: memref<128x128xbf16, #tpu.memory_space<vmem>>, %arg3: memref<1x128xf32, #tpu.memory_space<vmem>>, %arg4: memref<256x128xf32, #tpu.memory_space<vmem>>) attributes {dimension_semantics = [#tpu.dimension_semantics<parallel>], iteration_bounds = array<i64: 2>, scalar_prefetch = 0 : i64, scratch_operands = 0 : i64, tpu.core_type = #tpu.core_type<tc>, window_params = [{transform_indices = @transform_0, window_bounds = array<i64: 256, 128>}, {pipeline_mode = #tpu.pipeline_mode<synchronous>, transform_indices = @transform_1, window_bounds = array<i64: 128, 128>}, {pipeline_mode = #tpu.pipeline_mode<synchronous>, transform_indices = @transform_2, window_bounds = array<i64: 1, 128>}, {transform_indices = @transform_3, window_bounds = array<i64: 256, 128>}]} {
    %c0 = arith.constant 0 : index
    %c0_0 = arith.constant 0 : index
    %0 = vector.load %arg1[%c0, %c0_0] : memref<256x128xbf16, #tpu.memory_space<vmem>>, vector<256x128xbf16>
    %c0_1 = arith.constant 0 : index
    %c0_2 = arith.constant 0 : index
    %1 = vector.load %arg2[%c0_1, %c0_2] : memref<128x128xbf16, #tpu.memory_space<vmem>>, vector<128x128xbf16>
    %cst = arith.constant dense<0.000000e+00> : vector<256x128xf32>
    %2 = tpu.matmul %0, %1, %cst {dimension_numbers = #tpu.dot_dimension_numbers<[1], [0], [0], [1], [0, 0, 1, 1], [], []>} : vector<256x128xbf16>, vector<128x128xbf16>, vector<256x128xf32> -> vector<256x128xf32>
    %c0_3 = arith.constant 0 : index
    %c0_4 = arith.constant 0 : index
    %3 = vector.load %arg3[%c0_3, %c0_4] : memref<1x128xf32, #tpu.memory_space<vmem>>, vector<1x128xf32>
    %4 = vector.broadcast %3 : vector<1x128xf32> to vector<256x128xf32>
    %5 = arith.addf %2, %4 : vector<256x128xf32>
    %c0_5 = arith.constant 0 : index
    %c0_6 = arith.constant 0 : index
    %6 = vector.load %arg4[%c0_5, %c0_6] : memref<256x128xf32, #tpu.memory_space<vmem>>, vector<256x128xf32>
    tpu.vector_store %arg4[%c0_5, %c0_6], %5 {strides = array<i32>} : memref<256x128xf32, #tpu.memory_space<vmem>>, vector<256x128xf32>,
    return
  }
  func.func @transform_0(%arg0: i32) -> (i32, i32) {
    %c0_i32 = arith.constant 0 : i32
    %c0_i32_0 = arith.constant 0 : i32
    return %arg0, %c0_i32 : i32, i32
  }
  func.func @transform_1(%arg0: i32) -> (i32, i32) {
    %c0_i32 = arith.constant 0 : i32
    %c0_i32_0 = arith.constant 0 : i32
    %c0_i32_1 = arith.constant 0 : i32
    return %c0_i32, %c0_i32_0 : i32, i32
  }
  func.func @transform_2(%arg0: i32) -> (i32, i32) {
    %c0_i32 = arith.constant 0 : i32
    %c0_i32_0 = arith.constant 0 : i32
    %c0_i32_1 = arith.constant 0 : i32
    return %c0_i32, %c0_i32_0 : i32, i32
  }
  func.func @transform_3(%arg0: i32) -> (i32, i32) {
    %c0_i32 = arith.constant 0 : i32
    %c0_i32_0 = arith.constant 0 : i32
    return %arg0, %c0_i32 : i32, i32
  }
}

</mosaic_0001>

<bundles_post_ra>
// kernel: tpu_custom_call.1
= control target key start
LH: loop header
LB: loop body
LE: loop exit
PB: predicated region body
PF: predicated region fallthrough
CT: control target
= control target key end

     0   :  { %8 = vsyncpa [#allocation3], 0  ;;  %s1367_s0 = inlined_call_operand.hbm [shape: bf16[512,128], index: 0, kind: input, shape index: {}]   ;;  %s1368_s1 = inlined_call_operand.hbm [shape: bf16[128,128], index: 1, kind: input, shape index: {}]   ;;  %s1369_s2 = inlined_call_operand.vmem [shape: f32[1,128], index: 2, kind: input, shape index: {}]   ;;  %s1370_s3 = inlined_call_operand.hbm [shape: f32[512,128], index: 3, kind: output, shape index: {}]  }
   0x1   :  { %10 = vsyncpa [#allocation3 + $0x1], 0 }
   0x2   :  { %11 = vsyncpa [#allocation6], 0 }
   0x3   :  { %12 = vsyncpa [#allocation4], 0 }
   0x4   :  { %14 = vsyncpa [#allocation4 + $0x1], 0  ;;  %s1069_s12 = smov 0   ;;  %s1071_s13 = smov 0  }
   0x5   :  { %s1073_s14 = smov 0   ;;  %s1075_s15 = smov 0  }
   0x6 LB: > { %s1090_s16 = sadd.s32 4294967295, %s1040_s15   ;;  %s696_s17 = sadd.s32 4294967294, %s1040_s15   ;;  %s1040_s15 = sphi %s1075_s15, %s1390_s15   ;;  %s1036_s14 = sphi %s1073_s14, %s1389_s14   ;;  %s1032_s13 = sphi %s1071_s13, %s1388_s13   ;;  %s1028_s12 = sphi %s1069_s12, %s1387_s12  }
   0x7   : > { %p40_p0 = scmp.ne.s32.totalorder %s1032_s13, %s1028_s12  ;;  %p1371_p1 = scmp.eq.s32.totalorder %s1090_s16, 0 }
   0x8   : > { %p112_p3 = scmp.eq.s32.totalorder %s696_s17, 1  ;;  %p697_p5 = scmp.ge.s32.totalorder %s1040_s15, 1 }
   0x9   : > { %p1099_p4 = por %p1371_p1, %p40_p0  ;;  %p119_p7 = scmp.lt.s32.totalorder %s1040_s15, 3 }
   0xa   : > { %p1104_p6 = por %p112_p3, %p40_p0  ;;  %s1042_s21 = smov [#allocation5]  }
   0xb   : > { %s1374_s18 = scalar_select %p1099_p4, 1, 0 }
   0xc   : > { %s1375_s19 = scalar_select %p1104_p6, 1, 0 }
   0xd   : > { %p1109_p8 = pnand %p697_p5, %p119_p7  ;;  %s131_s22 = sshll.u32 %s1042_s21, 4  ;;  %s1113_s22 = int_to_ptr.vmem [resolvable:$true] %s131_s22 }
   0xe   : > { %s1125_s24 = sadd.s32 1, %s1040_s15   ;;  %s27_s25 = sadd.s32 1, %s1036_s14 }
   0xf   : > { %s1376_s20 = scalar_select %p1109_p8, 1, 0 }
  0x10   : > { %p835_p9 = pneg %p1109_p8  ;;  %s24_s26 = ssub.s32 %s1040_s15, %s1125_s24 }
  0x11   : > { %s912_s29 = scalar_lea.hbm %s1368_s1, 1024 }
  0x12   : > { %p1120_p11 = pnand %p835_p9, %p1371_p1  ;;  %p913_p12 = scmp.ne.s32.totalorder %s1368_s1, %s912_s29 }
  0x13   : > { %p919_p5 = scmp.lt.u32.totalorder %s912_s29, %s1368_s1 }
  0x14   : > { %p914_p13 = pneg %p1120_p11 }
  0x16   : > { %p915_p0 = pnand %p914_p13, %p913_p12 }
  0x18   : > { %p916_p3 = pneg %p915_p0 }
  0x1a   : > { %p921_p7 = pnand %p919_p5, %p916_p3 }
  0x1c   : > { %924 = shalt.err (!%p921_p7)
}
  0x1d   : > { %s925_s7 = scalar_lea.vmem %s1113_s22, 1024  ;;  %p933_p2 = scmp.lt.s32.totalorder %s1113_s22, %s1113_s22 }
  0x1e   : > { %p926_p9 = scmp.ne.s32.totalorder %s1113_s22, %s925_s7  ;;  %p934_p6 = scmp.lt.s32.totalorder %s925_s7, %s925_s7 }
  0x20   : > { %p928_p10 = pnand %p926_p9, %p914_p13  ;;  %p935_p4 = por %p934_p6, %p933_p2 }
  0x22   : > { %p929_p1 = pneg %p928_p10 }
  0x24   : > { %p936_p8 = pnand %p935_p4, %p929_p1 }
  0x26   : > { %939 = shalt.err (!%p936_p8)
}
  0x27   : > { %s1043_s8 = smov 64   ;;  %s1044_s9 = smov 4  }
  0x28   : > { %838 = dma.hbm_to_vmem [thread:$0]  (!%p1120_p11), %s1368_s1, 1024, %s1113_s22, [#allocation6], %s1043_s8, %s1043_s8, %s1044_s9  }
  0x29   : > { %p25_p1 = scmp.eq.s32.totalorder %s24_s26, 0  ;;  %p34_p2 = scmp.ne.s32.totalorder %s1036_s14, %s1032_s13 }
  0x2a   : > { %p35_p4 = scmp.eq.s32.totalorder %s1040_s15, 0  ;;  %p848_p6 = scmp.lt.s32.totalorder %s1040_s15, 2 }
  0x2b   : > { %s1159_s17 = scalar_select %p25_p1, %s1036_s14, %s27_s25  }
  0x2c   : > { %p36_p8 = por %p35_p4, %p34_p2  ;;  %p1378_p10 = scmp.eq.s32.totalorder %s1090_s16, 1 }
  0x2d   : > { %s148_s23 = sand.u32 1, %s1036_s14   ;;  %s737_s27 = sshll.u32 %s1040_s15, 11 }
  0x2e   : > { %p1163_p12 = por %p1378_p10, %p34_p2  ;;  %s700_s28 = sshll.u32 %s148_s23, 7 }
  0x2f   : > { %s1172_s4 = scalar_lea.hbm %s1367_s0, %s737_s27  ;;  %s152_s22 = scalar_lea.vmem [#allocation2], %s700_s28 }
  0x30   : > { %s159_s25 = sshll.u32 %s152_s22, 4  ;;  %p1174_p11 = pnand %p848_p6, %p36_p8  ;;  %s1178_s25 = int_to_ptr.vmem [resolvable:$true] %s159_s25 }
  0x31   : > { %s1180_s5 = scalar_lea.sflag [#allocation3], %s148_s23  ;;  %s940_s6 = scalar_lea.hbm %s1172_s4, 2048 }
  0x32   : > { %p941_p13 = scmp.ne.s32.totalorder %s1172_s4, %s940_s6  ;;  %p942_p0 = pneg %p1174_p11 }
  0x33   : > { %s945_s11 = scalar_lea.hbm %s1367_s0, 4096  ;;  %p946_p7 = scmp.lt.u32.totalorder %s1172_s4, %s1367_s0 }
  0x34   : > { %p943_p3 = pnand %p942_p0, %p941_p13  ;;  %p947_p9 = scmp.lt.u32.totalorder %s945_s11, %s940_s6 }
  0x35   : > { %p949_p2 = scmp.lt.u32.totalorder %s940_s6, %s1172_s4 }
  0x36   : > { %p944_p5 = pneg %p943_p3  ;;  %p948_p1 = por %p947_p9, %p946_p7 }
  0x38   : > { %p950_p4 = por %p949_p2, %p948_p1 }
  0x3a   : > { %p951_p6 = pnand %p950_p4, %p944_p5 }
  0x3c   : > { %954 = shalt.err (!%p951_p6)
}
  0x3d   : > { %s955_s23 = scalar_lea.vmem %s1178_s25, 2048  ;;  %s1045_s29 = smov [#allocation2]  }
  0x3e   : > { %p956_p8 = scmp.ne.s32.totalorder %s1178_s25, %s955_s23  ;;  %s960_s30 = sshll.u32 %s1045_s29, 4  ;;  %s961_s30 = int_to_ptr.vmem [resolvable:$false] %s960_s30 }
  0x3f   : > { %s962_s22 = scalar_lea.vmem %s961_s30, 4096  ;;  %p963_p3 = scmp.lt.s32.totalorder %s1178_s25, %s961_s30 }
  0x40   : > { %p958_p10 = pnand %p956_p8, %p942_p0  ;;  %p964_p7 = scmp.lt.s32.totalorder %s962_s22, %s955_s23 }
  0x42   : > { %p959_p13 = pneg %p958_p10  ;;  %p965_p9 = por %p964_p7, %p963_p3 }
  0x44   : > { %p966_p1 = pnand %p965_p9, %p959_p13 }
  0x46   : > { %969 = shalt.err (!%p966_p1)
}
  0x47   : > { %842 = dma.hbm_to_vmem [thread:$0]  (!%p1174_p11), %s1172_s4, 2048, %s1178_s25, %s1180_s5, %s1043_s8, %s1043_s8, %s1044_s9  }
  0x48   : > { %p1381_p0 = scmp.ne.s32.totalorder %s1376_s20, 0 }
  0x49   : > { %s1214_s6 = sand.u32 (!%p1381_p0), 1, %s1032_s13   ;;  %p1382_p5 = scmp.ne.s32.totalorder (!%p1381_p0), %s1374_s18, 0 }
  0x4a   : > { %171 = sbr.rel (%p1381_p0) target bundleno = 374 (0x176), region = 32  ;;  %s704_s7 = sshll.u32 (!%p1381_p0), %s1214_s6, 7 }
  0x4b   : > { %s174_s10 = scalar_lea.sflag (!%p1381_p0), [#allocation3], %s1214_s6  ;;  %s1218_s11 = scalar_lea.vmem (!%p1381_p0), [#allocation2], %s704_s7 }
  0x51   : > { %1015 = dma.done.wait (%p1382_p5), %s174_s10, 2048  }
  0x52   : > { %1017 = vsyncadd (%p1382_p5), %s174_s10, 4294965248  ;;  %p1383_p11 = scmp.eq.s32.totalorder %s1090_s16, 0 }
  0x54   : > { %1019 = dma.done.wait (%p1383_p11), [#allocation6], 1024   ;;  %p1384_p2 = pmov %p1383_p11 }
  0x55   : > { %v888_v0 = vld [vmem:[#allocation5] sm:$0xff]   ;;  %v889_v1 = vld [vmem:[#allocation5 + $0x8] sm:$0xff]   ;;  %v890_v2 = vld [vmem:[#allocation5 + $0x10] sm:$0xff]   ;;  %s706_s18 = sshll.u32 %s1214_s6, 8  ;;  %s738_s4 = sshll.u32 %s1090_s16, 12 }
  0x56   : > { %1021 = vsyncadd (%p1384_p2), [#allocation6], 4294966272  ;;  %763 = vmatprep.subr.bf16.mxu0 %v888_v0  ;;  %811 = vmatprep.subr.bf16.mxu1 %v888_v0  ;;  %v891_v3 = vld [vmem:[#allocation5 + $0x18] sm:$0xff]   ;;  %v896_v4 = vld [vmem:[%s1218_s11] sm:$0xff]   ;;  %s1254_s9 = scalar_lea.vmem [#allocation7], %s706_s18  ;;  %s1313_s5 = scalar_lea.hbm %s1370_s3, %s738_s4 }
  0x57   : > { %764 = vmatpush3.bf16.msra.mxu0 %v888_v0  ;;  %819 = vmatpush3.bf16.msra.mxu1 %v888_v0  ;;  %v897_v5 = vld [vmem:[%s1218_s11 + $0x40] sm:$0xff]   ;;  %v893_v7 = vld [vmem:[#allocation5 + $0x28] sm:$0xff]   ;;  %v894_v8 = vld [vmem:[#allocation5 + $0x30] sm:$0xff]   ;;  %s613_s25 = sshll.u32 %s1254_s9, 4  ;;  %s600_s27 = scalar_lea.sflag [#allocation4], %s1214_s6  ;;  %s1315_s25 = int_to_ptr.vmem [resolvable:$true] %s613_s25 }
  0x58   : > { %765 = vmatprep.subr.bf16.mxu0 %v889_v1  ;;  %812 = vmatprep.subr.bf16.mxu1 %v889_v1  ;;  %v892_v6 = vld [vmem:[#allocation5 + $0x20] sm:$0xff]   ;;  %v895_v9 = vld [vmem:[#allocation5 + $0x38] sm:$0xff]   ;;  %v898_v10 = vld [vmem:[%s1218_s11 + $0x8] sm:$0xff]   ;;  %s970_s28 = scalar_lea.vmem %s1315_s25, 4096  ;;  %s1046_s23 = smov [#allocation7]  }
  0x59   : > { %779 = vmatprep.mubr.bf16.mxu0 %v896_v4  ;;  %795 = vmatprep.mubr.bf16.mxu1 %v897_v5  ;;  %v899_v11 = vld [vmem:[%s1218_s11 + $0x48] sm:$0xff]   ;;  %v900_v12 = vld [vmem:[%s1218_s11 + $0x10] sm:$0xff]   ;;  %v902_v14 = vld [vmem:[%s1218_s11 + $0x18] sm:$0xff]   ;;  %p971_p4 = scmp.ne.s32.totalorder %s1315_s25, %s970_s28  ;;  %s974_s29 = sshll.u32 %s1046_s23, 4  ;;  %s975_s29 = int_to_ptr.vmem [resolvable:$false] %s974_s29 }
  0x5a   : > { %v901_v13 = vld [vmem:[%s1218_s11 + $0x50] sm:$0xff]   ;;  %v903_v15 = vld [vmem:[%s1218_s11 + $0x58] sm:$0xff]   ;;  %v904_v16 = vld [vmem:[%s1218_s11 + $0x20] sm:$0xff]   ;;  %s976_s30 = scalar_lea.vmem %s975_s29, 8192  ;;  %p977_p10 = scmp.lt.s32.totalorder %s1315_s25, %s975_s29 }
  0x5b   : > { %766 = vmatpush3.bf16.msra.mxu0 %v889_v1  ;;  %820 = vmatpush3.bf16.msra.mxu1 %v889_v1  ;;  %v905_v17 = vld [vmem:[%s1218_s11 + $0x60] sm:$0xff]   ;;  %v906_v18 = vld [vmem:[%s1218_s11 + $0x28] sm:$0xff]   ;;  %v908_v20 = vld [vmem:[%s1218_s11 + $0x30] sm:$0xff]   ;;  %p972_p6 = pnand %p971_p4, %p1163_p12  ;;  %p978_p13 = scmp.lt.s32.totalorder %s976_s30, %s970_s28 }
  0x5c   : > { %767 = vmatprep.subr.bf16.mxu0 %v890_v2  ;;  %813 = vmatprep.subr.bf16.mxu1 %v890_v2  ;;  %v907_v19 = vld [vmem:[%s1218_s11 + $0x68] sm:$0xff]   ;;  %v909_v21 = vld [vmem:[%s1218_s11 + $0x70] sm:$0xff]   ;;  %v910_v22 = vld [vmem:[%s1218_s11 + $0x38] sm:$0xff]  }
  0x5d   : > { %v911_v23 = vld [vmem:[%s1218_s11 + $0x78] sm:$0xff]   ;;  %v1248_v24 = vld [vmem:[%s1369_s2] ss:$0 sm:$0xff]  ;;  %p973_p8 = pneg %p972_p6  ;;  %p979_p3 = por %p978_p13, %p977_p10 }
  0x5f   : > { %768 = vmatpush3.bf16.msra.mxu0 %v890_v2  ;;  %821 = vmatpush3.bf16.msra.mxu1 %v890_v2  ;;  %p980_p7 = pnand %p979_p3, %p973_p8 }
  0x60   : > { %769 = vmatprep.subr.bf16.mxu0 %v891_v3  ;;  %814 = vmatprep.subr.bf16.mxu1 %v891_v3 }
  0x63   : > { %770 = vmatpush3.bf16.msra.mxu0 %v891_v3  ;;  %822 = vmatpush3.bf16.msra.mxu1 %v891_v3 }
  0x64   : > { %771 = vmatprep.subr.bf16.mxu0 %v892_v6  ;;  %815 = vmatprep.subr.bf16.mxu1 %v892_v6 }
  0x67   : > { %772 = vmatpush3.bf16.msra.mxu0 %v892_v6  ;;  %823 = vmatpush3.bf16.msra.mxu1 %v892_v6 }
  0x68   : > { %773 = vmatprep.subr.bf16.mxu0 %v893_v7  ;;  %816 = vmatprep.subr.bf16.mxu1 %v893_v7 }
  0x6b   : > { %774 = vmatpush3.bf16.msra.mxu0 %v893_v7  ;;  %824 = vmatpush3.bf16.msra.mxu1 %v893_v7 }
  0x6c   : > { %775 = vmatprep.subr.bf16.mxu0 %v894_v8  ;;  %817 = vmatprep.subr.bf16.mxu1 %v894_v8 }
  0x6f   : > { %776 = vmatpush3.bf16.msra.mxu0 %v894_v8  ;;  %825 = vmatpush3.bf16.msra.mxu1 %v894_v8 }
  0x70   : > { %777 = vmatprep.subr.bf16.mxu0 %v895_v9  ;;  %818 = vmatprep.subr.bf16.mxu1 %v895_v9 }
  0x73   : > { %778 = vmatpush3.bf16.msra.mxu0 %v895_v9  ;;  %826 = vmatpush3.bf16.msra.mxu1 %v895_v9 }
  0x76   : > { %780 = vmatmul.mubr.bf16.vlgmr.msra.gmra.mrb[0].mxu0 %v898_v10  ;;  %796 = vmatmul.mubr.bf16.vlgmr.msra.gmra.mrb[0].mxu1 %v899_v11 }
  0x77   : > { %783 = vmatprep.mubr.bf16.mxu0 %v900_v12  ;;  %799 = vmatprep.mubr.bf16.mxu1 %v901_v13 }
  0x7e   : > { %784 = vmatmul.mubr.bf16.gmra.mrb[4].mxu0 %v902_v14  ;;  %800 = vmatmul.mubr.bf16.gmra.mrb[4].mxu1 %v903_v15 }
  0x7f   : > { %787 = vmatprep.mubr.bf16.mxu0 %v904_v16  ;;  %803 = vmatprep.mubr.bf16.mxu1 %v905_v17 }
  0x86   : > { %788 = vmatmul.mubr.bf16.gmra.mrb[8].mxu0 %v906_v18  ;;  %804 = vmatmul.mubr.bf16.gmra.mrb[8].mxu1 %v907_v19 }
  0x87   : > { %791 = vmatprep.mubr.bf16.mxu0 %v908_v20  ;;  %807 = vmatprep.mubr.bf16.mxu1 %v909_v21 }
  0x8e   : > { %792 = vmatmul.mubr.bf16.gmra.mrb[12].mxu0 %v910_v22  ;;  %808 = vmatmul.mubr.bf16.gmra.mrb[12].mxu1 %v911_v23 }
 0x149   : > { %v781_v25 = vpop.f32.mrb[0].mxu0  ;;  %v797_v26 = vpop.f32.mrb[0].mxu1 }
 0x14a   : > { %v449_v27 = vadd.f32 %v781_v25, %v1248_v24  ;;  %v513_v28 = vadd.f32 %v797_v26, %v1248_v24  ;;  %v440_v29 = vpop.f32.mrb[1].mxu0  ;;  %v504_v30 = vpop.f32.mrb[1].mxu1 }
 0x14b   : > { %v441_v31 = vadd.f32 %v1248_v24, %v440_v29  ;;  %v505_v32 = vadd.f32 %v1248_v24, %v504_v30  ;;  %v782_v33 = vpop.f32.mrb[2].mxu0  ;;  %v798_v34 = vpop.f32.mrb[2].mxu1 }
 0x14c   : > { %569 = vst [vmem:[%s1254_s9 + $0x10] sm:$0xff] %v449_v27  ;;  %585 = vst [vmem:[%s1254_s9 + $0x90] sm:$0xff] %v513_v28  ;;  %v452_v35 = vadd.f32 %v782_v33, %v1248_v24  ;;  %v516_v36 = vadd.f32 %v798_v34, %v1248_v24  ;;  %v443_v37 = vpop.f32.mrb[3].mxu0  ;;  %v507_v38 = vpop.f32.mrb[3].mxu1 }
 0x14d   : > { %567 = vst [vmem:[%s1254_s9] sm:$0xff] %v441_v31  ;;  %583 = vst [vmem:[%s1254_s9 + $0x80] sm:$0xff] %v505_v32  ;;  %v444_v39 = vadd.f32 %v1248_v24, %v443_v37  ;;  %v508_v40 = vadd.f32 %v1248_v24, %v507_v38 }
 0x14e   : > { %570 = vst [vmem:[%s1254_s9 + $0x18] sm:$0xff] %v452_v35  ;;  %586 = vst [vmem:[%s1254_s9 + $0x98] sm:$0xff] %v516_v36 }
 0x14f   : > { %568 = vst [vmem:[%s1254_s9 + $0x8] sm:$0xff] %v444_v39  ;;  %584 = vst [vmem:[%s1254_s9 + $0x88] sm:$0xff] %v508_v40 }
 0x151   : > { %v785_v41 = vpop.f32.mrb[4].mxu0  ;;  %v801_v42 = vpop.f32.mrb[4].mxu1 }
 0x152   : > { %v465_v43 = vadd.f32 %v785_v41, %v1248_v24  ;;  %v529_v44 = vadd.f32 %v801_v42, %v1248_v24  ;;  %v456_v45 = vpop.f32.mrb[5].mxu0  ;;  %v520_v46 = vpop.f32.mrb[5].mxu1 }
 0x153   : > { %v457_v47 = vadd.f32 %v1248_v24, %v456_v45  ;;  %v521_v48 = vadd.f32 %v1248_v24, %v520_v46  ;;  %v786_v49 = vpop.f32.mrb[6].mxu0  ;;  %v802_v50 = vpop.f32.mrb[6].mxu1 }
 0x154   : > { %573 = vst [vmem:[%s1254_s9 + $0x30] sm:$0xff] %v465_v43  ;;  %589 = vst [vmem:[%s1254_s9 + $0xb0] sm:$0xff] %v529_v44  ;;  %v468_v51 = vadd.f32 %v786_v49, %v1248_v24  ;;  %v532_v52 = vadd.f32 %v802_v50, %v1248_v24  ;;  %v459_v53 = vpop.f32.mrb[7].mxu0  ;;  %v523_v54 = vpop.f32.mrb[7].mxu1 }
 0x155   : > { %571 = vst [vmem:[%s1254_s9 + $0x20] sm:$0xff] %v457_v47  ;;  %587 = vst [vmem:[%s1254_s9 + $0xa0] sm:$0xff] %v521_v48  ;;  %v460_v55 = vadd.f32 %v1248_v24, %v459_v53  ;;  %v524_v56 = vadd.f32 %v1248_v24, %v523_v54 }
 0x156   : > { %574 = vst [vmem:[%s1254_s9 + $0x38] sm:$0xff] %v468_v51  ;;  %590 = vst [vmem:[%s1254_s9 + $0xb8] sm:$0xff] %v532_v52 }
 0x157   : > { %572 = vst [vmem:[%s1254_s9 + $0x28] sm:$0xff] %v460_v55  ;;  %588 = vst [vmem:[%s1254_s9 + $0xa8] sm:$0xff] %v524_v56 }
 0x159   : > { %v789_v57 = vpop.f32.mrb[8].mxu0  ;;  %v805_v58 = vpop.f32.mrb[8].mxu1 }
 0x15a   : > { %v481_v59 = vadd.f32 %v789_v57, %v1248_v24  ;;  %v545_v60 = vadd.f32 %v805_v58, %v1248_v24  ;;  %v472_v61 = vpop.f32.mrb[9].mxu0  ;;  %v536_v62 = vpop.f32.mrb[9].mxu1 }
 0x15b   : > { %v473_v63 = vadd.f32 %v1248_v24, %v472_v61  ;;  %v537_v0 = vadd.f32 %v1248_v24, %v536_v62  ;;  %v790_v1 = vpop.f32.mrb[10].mxu0  ;;  %v806_v2 = vpop.f32.mrb[10].mxu1 }
 0x15c   : > { %577 = vst [vmem:[%s1254_s9 + $0x50] sm:$0xff] %v481_v59  ;;  %593 = vst [vmem:[%s1254_s9 + $0xd0] sm:$0xff] %v545_v60  ;;  %v484_v3 = vadd.f32 %v790_v1, %v1248_v24  ;;  %v548_v4 = vadd.f32 %v806_v2, %v1248_v24  ;;  %v475_v5 = vpop.f32.mrb[11].mxu0  ;;  %v539_v6 = vpop.f32.mrb[11].mxu1 }
 0x15d   : > { %575 = vst [vmem:[%s1254_s9 + $0x40] sm:$0xff] %v473_v63  ;;  %591 = vst [vmem:[%s1254_s9 + $0xc0] sm:$0xff] %v537_v0  ;;  %v476_v7 = vadd.f32 %v1248_v24, %v475_v5  ;;  %v540_v8 = vadd.f32 %v1248_v24, %v539_v6 }
 0x15e   : > { %578 = vst [vmem:[%s1254_s9 + $0x58] sm:$0xff] %v484_v3  ;;  %594 = vst [vmem:[%s1254_s9 + $0xd8] sm:$0xff] %v548_v4 }
 0x15f   : > { %576 = vst [vmem:[%s1254_s9 + $0x48] sm:$0xff] %v476_v7  ;;  %592 = vst [vmem:[%s1254_s9 + $0xc8] sm:$0xff] %v540_v8 }
 0x161   : > { %v793_v9 = vpop.f32.mrb[12].mxu0  ;;  %v809_v10 = vpop.f32.mrb[12].mxu1 }
 0x162   : > { %v497_v11 = vadd.f32 %v793_v9, %v1248_v24  ;;  %v561_v12 = vadd.f32 %v809_v10, %v1248_v24  ;;  %v488_v13 = vpop.f32.mrb[13].mxu0  ;;  %v552_v14 = vpop.f32.mrb[13].mxu1 }
 0x163   : > { %v489_v15 = vadd.f32 %v1248_v24, %v488_v13  ;;  %v553_v16 = vadd.f32 %v1248_v24, %v552_v14  ;;  %v794_v17 = vpop.f32.mrb[14].mxu0  ;;  %v810_v18 = vpop.f32.mrb[14].mxu1 }
 0x164   : > { %581 = vst [vmem:[%s1254_s9 + $0x70] sm:$0xff] %v497_v11  ;;  %597 = vst [vmem:[%s1254_s9 + $0xf0] sm:$0xff] %v561_v12  ;;  %v500_v19 = vadd.f32 %v794_v17, %v1248_v24  ;;  %v564_v20 = vadd.f32 %v810_v18, %v1248_v24  ;;  %v491_v21 = vpop.f32.mrb[15].mxu0  ;;  %v555_v22 = vpop.f32.mrb[15].mxu1 }
 0x165   : > { %579 = vst [vmem:[%s1254_s9 + $0x60] sm:$0xff] %v489_v15  ;;  %595 = vst [vmem:[%s1254_s9 + $0xe0] sm:$0xff] %v553_v16  ;;  %v492_v23 = vadd.f32 %v1248_v24, %v491_v21  ;;  %v556_v25 = vadd.f32 %v1248_v24, %v555_v22 }
 0x166   : > { %582 = vst [vmem:[%s1254_s9 + $0x78] sm:$0xff] %v500_v19  ;;  %598 = vst [vmem:[%s1254_s9 + $0xf8] sm:$0xff] %v564_v20 }
 0x167   : > { %580 = vst [vmem:[%s1254_s9 + $0x68] sm:$0xff] %v492_v23  ;;  %596 = vst [vmem:[%s1254_s9 + $0xe8] sm:$0xff] %v556_v25 }
 0x168   : > { %983 = shalt.err (!%p980_p7)
}
 0x169   : > { %s984_s22 = scalar_lea.hbm %s1313_s5, 4096  ;;  %s988_s11 = scalar_lea.hbm %s1370_s3, 8192 }
 0x16a   : > { %p985_p9 = scmp.ne.s32.totalorder %s1313_s5, %s984_s22  ;;  %p989_p5 = scmp.lt.u32.totalorder %s1313_s5, %s1370_s3 }
 0x16b   : > { %p990_p11 = scmp.lt.u32.totalorder %s988_s11, %s984_s22  ;;  %p992_p4 = scmp.lt.u32.totalorder %s984_s22, %s1313_s5 }
 0x16c   : > { %p986_p1 = pnand %p985_p9, %p1163_p12 }
 0x16d   : > { %p991_p2 = por %p990_p11, %p989_p5 }
 0x16e   : > { %p987_p0 = pneg %p986_p1 }
 0x16f   : > { %p993_p6 = por %p992_p4, %p991_p2 }
 0x171   : > { %p994_p8 = pnand %p993_p6, %p987_p0 }
 0x173   : > { %997 = shalt.err (!%p994_p8)
}
 0x174   : > { %s1047_s8 = smov 128   ;;  %s1048_s9 = smov 8  }
 0x175   : > { %833 = dma.vmem_to_hbm [thread:$0]  (%p1163_p12), %s1315_s25, 4096, %s1313_s5, %s600_s27, %s1047_s8, %s1047_s8, %s1048_s9  }
 0x176 PF: > { %s628_s4 = sand.u32 1, %s1028_s12   ;;  %p1385_p10 = scmp.ne.s32.totalorder %s1375_s19, 0 }
 0x177   : > { %p1386_p13 = scmp.ge.s32.totalorder %s1040_s15, 2  ;;  %s629_s16 = scalar_lea.sflag [#allocation4], %s628_s4 }
 0x179   : > { %p844_p3 = pnand %p1386_p13, %p1385_p10 }
 0x17b   : > { %1023 = dma.done.wait (!%p844_p3), %s629_s16, 4096  }
 0x17c   : > { %1025 = vsyncadd (!%p844_p3), %s629_s16, 4294963200  ;;  %p17_p7 = scmp.ge.s32.totalorder %s1125_s24, 4   ;;  %s1387_s12 = smov %s1032_s13 }
 0x17d   : > { %s1388_s13 = smov %s1036_s14  ;;  %s1389_s14 = smov %s1159_s17 }
 0x17e   : > { %s1390_s15 = smov %s1125_s24  ;;  %19 = sbr.rel (!%p17_p7) target bundleno = 6 (0x6), region = 81 }
 0x185   :  { %634 = vsyncpa [#allocation3], 1 }
 0x186   :  { %636 = vsyncpa [#allocation3 + $0x1], 1 }
 0x187   :  { %637 = vsyncpa [#allocation6], 1 }
 0x188   :  { %638 = vsyncpa [#allocation4], 1 }
 0x189   :  { %640 = vsyncpa [#allocation4 + $0x1], 1 }

</bundles_post_ra>
